<compile_context>
chip_gen: v5e
topology: v5e:2x2
jax: 0.10.0
libtpu: 0.0.40
codegen_flags: <defaults>
</compile_context>

<pallas_src>
import functools
import math

import jax
import jax.numpy as jnp
from jax.experimental import pallas as pl
from jax.experimental.pallas import tpu as pltpu

HIDDEN = 256


def _round_up(x, m):
    return (x + m - 1) // m * m


def _policy_kernel(x_ref, wb_ref, bb_ref, wh_ref, bh_ref, o_ref, *, n_actions):
    # base linear + ReLU: bf16 x bf16 MXU matmul, f32 accumulation, f32 elementwise
    h = jnp.dot(x_ref[...].astype(jnp.bfloat16), wb_ref[...],
                preferred_element_type=jnp.float32) + bb_ref[...]
    h = jnp.maximum(h, 0.0)

    # fused action+value heads: single lane-padded (HIDDEN, 128k) matmul
    logits = jnp.dot(h.astype(jnp.bfloat16), wh_ref[...],
                     preferred_element_type=jnp.float32) + bh_ref[...]

    col = jax.lax.broadcasted_iota(jnp.int32, logits.shape, dimension=1)
    is_action = col < n_actions

    # numerically-stable softmax over the action columns only
    masked = jnp.where(is_action, logits, -1e30)
    m = jnp.max(masked, axis=-1, keepdims=True)
    e = jnp.exp(masked - m)
    probs = e * pl.reciprocal(jnp.sum(e, axis=-1, keepdims=True), approx=True)

    # pack: cols [0, A) = action probs, col A = value, rest = 0 -> one lane-dense store
    out = jnp.where(is_action, probs, jnp.where(col == n_actions, logits, 0.0))
    o_ref[...] = out.astype(o_ref.dtype)


def fuse_params(params):
    """Host-side, once per parameter set: concat + lane-pad the two heads, cast
    matmul operands to bf16 (biases stay f32)."""
    wa, ba = params["wa"], params["ba"]
    wv, bv = params["wv"], params["bv"]
    A = wa.shape[1]
    head_pad = _round_up(A + 1, 128)

    wh = jnp.zeros((HIDDEN, head_pad), jnp.float32)
    wh = wh.at[:, :A].set(wa).at[:, A].set(wv[:, 0])
    bh = jnp.zeros((1, head_pad), jnp.float32)
    bh = bh.at[:, :A].set(ba).at[:, A].set(bv[:, 0])

    return {
        "wb": params["wb"].astype(jnp.bfloat16),
        "bb": params["bb"].astype(jnp.float32),
        "wh": wh.astype(jnp.bfloat16),
        "bh": bh,
        "n_actions": A,
    }


def policy_network_forward(x, fused):
    """x: [B, state_space] float32.  fused: output of fuse_params().  Returns (a, v)."""
    wb, bb, wh, bh = fused["wb"], fused["bb"], fused["wh"], fused["bh"]
    A = int(fused["n_actions"])

    B, S = x.shape
    head_pad = wh.shape[1]

    # Batch tiling: multiples of 8 sublanes.  Big tiles amortize the ~0.35us/step grid
    # overhead; even at 1024 rows the double-buffered x + output tiles stay far below the
    # 32 MiB default scoped-VMEM limit (safe on v7x's 64 MiB physical VMEM as well).
    B_pad = _round_up(max(B, 8), 8)
    b_tile = min(B_pad, 1024)
    B_pad = _round_up(B_pad, b_tile)
    x_p = jnp.pad(x, ((0, B_pad - B), (0, 0)))

    grid = (B_pad // b_tile,)

    cost = pl.CostEstimate(
        flops=2 * B_pad * (S * HIDDEN + HIDDEN * head_pad),
        transcendentals=B_pad * head_pad,
        bytes_accessed=(x_p.size * 4 + wb.size * 2 + bb.size * 4
                        + wh.size * 2 + bh.size * 4 + B_pad * head_pad * 4),
    )

    slab = pl.pallas_call(
        functools.partial(_policy_kernel, n_actions=A),
        out_shape=jax.ShapeDtypeStruct((B_pad, head_pad), jnp.float32),
        grid=grid,
        in_specs=[
            pl.BlockSpec((b_tile, S), lambda i: (i, 0)),        # x: pipelined over batch
            pl.BlockSpec((S, HIDDEN), lambda i: (0, 0)),        # weights pinned in VMEM
            pl.BlockSpec((1, HIDDEN), lambda i: (0, 0)),
            pl.BlockSpec((HIDDEN, head_pad), lambda i: (0, 0)),
            pl.BlockSpec((1, head_pad), lambda i: (0, 0)),
        ],
        out_specs=pl.BlockSpec((b_tile, head_pad), lambda i: (i, 0)),
        compiler_params=pltpu.CompilerParams(
            dimension_semantics=("parallel",)),                 # shards batch over v7x's 2 TCs
        cost_estimate=cost,
    )(x_p, wb, bb, wh, bh)

    a = slab[:B, :A]
    v = slab[:B, A:A + 1]
    return a, v


def init_params(key, state_space, n_actions):
    """Deterministic init mirroring nn.Linear: U(-1/sqrt(fan_in), +1/sqrt(fan_in))."""
    ks = jax.random.split(key, 6)

    def linear(kw, kb, fan_in, fan_out):
        bound = 1.0 / math.sqrt(fan_in)
        w = jax.random.uniform(kw, (fan_in, fan_out), jnp.float32, -bound, bound)
        b = jax.random.uniform(kb, (1, fan_out), jnp.float32, -bound, bound)
        return w, b

    wb, bb = linear(ks[0], ks[1], state_space, HIDDEN)
    wa, ba = linear(ks[2], ks[3], HIDDEN, n_actions)
    wv, bv = linear(ks[4], ks[5], HIDDEN, 1)
    return {"wb": wb, "bb": bb, "wa": wa, "ba": ba, "wv": wv, "bv": bv}


if __name__ == "__main__":
    key = jax.random.PRNGKey(0)
    k_x, k_p = jax.random.split(key)

    batch, state_space, n_actions = 2, 4, 6
    x = jax.random.normal(k_x, (batch, state_space), jnp.float32)
    params = init_params(k_p, state_space, n_actions)
    fused = fuse_params(params)

    a, v = policy_network_forward(x, fused)
    jax.block_until_ready((a, v))

    # shapes match the module contract; softmax rows sum to 1
    assert a.shape == (batch, n_actions)
    assert v.shape == (batch, 1)
    assert jnp.allclose(jnp.sum(a, axis=-1), 1.0, atol=1e-2)

    # cross-check against plain-JAX f32 reference (bf16 matmul operands => looser tol)
    h_ref = jnp.maximum(x @ params["wb"] + params["bb"], 0.0)
    a_ref = jax.nn.softmax(h_ref @ params["wa"] + params["ba"], axis=-1)
    v_ref = h_ref @ params["wv"] + params["bv"]
    assert jnp.allclose(a, a_ref, atol=2e-2)
    assert jnp.allclose(v, v_ref, atol=2e-2)

    # TODO(synk): select_action (Categorical sampling) and the REINFORCE/critic training
    # loop are host-side RL bookkeeping, not part of the forward pass, and are not kernels.

    print("KERNEL_OK")
</pallas_src>

<mosaic_0001>
module attributes {stable_mosaic.version = 11 : i64} {
  func.func @_policy_kernel(%arg0: i32, %arg1: memref<8x4xf32, #tpu.memory_space<vmem>>, %arg2: memref<4x256xbf16, #tpu.memory_space<vmem>>, %arg3: memref<1x256xf32, #tpu.memory_space<vmem>>, %arg4: memref<256x128xbf16, #tpu.memory_space<vmem>>, %arg5: memref<1x128xf32, #tpu.memory_space<vmem>>, %arg6: memref<8x128xf32, #tpu.memory_space<vmem>>) attributes {dimension_semantics = [#tpu.dimension_semantics<parallel>], iteration_bounds = array<i64: 1>, scalar_prefetch = 0 : i64, scratch_operands = 0 : i64, tpu.core_type = #tpu.core_type<tc>, window_params = [{transform_indices = @transform_0, window_bounds = array<i64: 8, 4>}, {pipeline_mode = #tpu.pipeline_mode<synchronous>, transform_indices = @transform_1, window_bounds = array<i64: 4, 256>}, {pipeline_mode = #tpu.pipeline_mode<synchronous>, transform_indices = @transform_2, window_bounds = array<i64: 1, 256>}, {pipeline_mode = #tpu.pipeline_mode<synchronous>, transform_indices = @transform_3, window_bounds = array<i64: 256, 128>}, {pipeline_mode = #tpu.pipeline_mode<synchronous>, transform_indices = @transform_4, window_bounds = array<i64: 1, 128>}, {transform_indices = @transform_5, window_bounds = array<i64: 8, 128>}]} {
    %c0 = arith.constant 0 : index
    %c0_0 = arith.constant 0 : index
    %0 = vector.load %arg1[%c0, %c0_0] : memref<8x4xf32, #tpu.memory_space<vmem>>, vector<8x4xf32>
    %1 = arith.truncf %0 : vector<8x4xf32> to vector<8x4xbf16>
    %c0_1 = arith.constant 0 : index
    %c0_2 = arith.constant 0 : index
    %2 = vector.load %arg2[%c0_1, %c0_2] : memref<4x256xbf16, #tpu.memory_space<vmem>>, vector<4x256xbf16>
    %cst = arith.constant dense<0.000000e+00> : vector<8x256xf32>
    %3 = tpu.matmul %1, %2, %cst {dimension_numbers = #tpu.dot_dimension_numbers<[1], [0], [0], [1], [0, 0, 1, 1], [], []>} : vector<8x4xbf16>, vector<4x256xbf16>, vector<8x256xf32> -> vector<8x256xf32>
    %c0_3 = arith.constant 0 : index
    %c0_4 = arith.constant 0 : index
    %4 = vector.load %arg3[%c0_3, %c0_4] : memref<1x256xf32, #tpu.memory_space<vmem>>, vector<1x256xf32>
    %5 = vector.broadcast %4 : vector<1x256xf32> to vector<8x256xf32>
    %6 = arith.addf %3, %5 : vector<8x256xf32>
    %cst_5 = arith.constant 0.000000e+00 : f32
    %7 = vector.broadcast %cst_5 : f32 to vector<8x256xf32>
    %8 = arith.maximumf %6, %7 : vector<8x256xf32>
    %9 = arith.truncf %8 : vector<8x256xf32> to vector<8x256xbf16>
    %c0_6 = arith.constant 0 : index
    %c0_7 = arith.constant 0 : index
    %10 = vector.load %arg4[%c0_6, %c0_7] : memref<256x128xbf16, #tpu.memory_space<vmem>>, vector<256x128xbf16>
    %cst_8 = arith.constant dense<0.000000e+00> : vector<8x128xf32>
    %11 = tpu.matmul %9, %10, %cst_8 {dimension_numbers = #tpu.dot_dimension_numbers<[1], [0], [0], [1], [0, 0, 1, 1], [], []>} : vector<8x256xbf16>, vector<256x128xbf16>, vector<8x128xf32> -> vector<8x128xf32>
    %c0_9 = arith.constant 0 : index
    %c0_10 = arith.constant 0 : index
    %12 = vector.load %arg5[%c0_9, %c0_10] : memref<1x128xf32, #tpu.memory_space<vmem>>, vector<1x128xf32>
    %13 = vector.broadcast %12 : vector<1x128xf32> to vector<8x128xf32>
    %14 = arith.addf %11, %13 : vector<8x128xf32>
    %15 = tpu.iota {dimensions = array<i32: 1>} : vector<8x128xi32>
    %c6_i32 = arith.constant 6 : i32
    %16 = vector.broadcast %c6_i32 : i32 to vector<8x128xi32>
    %17 = arith.cmpi slt, %15, %16 : vector<8x128xi32>
    %cst_11 = arith.constant -1.000000e+30 : f32
    %18 = vector.broadcast %cst_11 : f32 to vector<8x128xf32>
    %19 = arith.select %17, %14, %18 : vector<8x128xi1>, vector<8x128xf32>
    %cst_12 = arith.constant dense<0xFF800000> : vector<8xf32>
    %20 = vector.multi_reduction <maximumf>, %19, %cst_12 [1] : vector<8x128xf32> to vector<8xf32>
    %21 = vector.shape_cast %20 : vector<8xf32> to vector<8x1xf32>
    %22 = vector.broadcast %21 : vector<8x1xf32> to vector<8x128xf32>
    %23 = arith.subf %19, %22 : vector<8x128xf32>
    %24 = math.exp %23 : vector<8x128xf32>
    %cst_13 = arith.constant dense<0.000000e+00> : vector<8xf32>
    %25 = vector.multi_reduction <add>, %24, %cst_13 [1] : vector<8x128xf32> to vector<8xf32>
    %26 = vector.shape_cast %25 : vector<8xf32> to vector<8x1xf32>
    %27 = tpu.reciprocal %26 {approx = true} : vector<8x1xf32> -> vector<8x1xf32>
    %28 = vector.broadcast %27 : vector<8x1xf32> to vector<8x128xf32>
    %29 = arith.mulf %24, %28 : vector<8x128xf32>
    %c6_i32_14 = arith.constant 6 : i32
    %30 = vector.broadcast %c6_i32_14 : i32 to vector<8x128xi32>
    %31 = arith.cmpi eq, %15, %30 : vector<8x128xi32>
    %cst_15 = arith.constant 0.000000e+00 : f32
    %32 = vector.broadcast %cst_15 : f32 to vector<8x128xf32>
    %33 = arith.select %31, %14, %32 : vector<8x128xi1>, vector<8x128xf32>
    %34 = arith.select %17, %29, %33 : vector<8x128xi1>, vector<8x128xf32>
    %c0_16 = arith.constant 0 : index
    %c0_17 = arith.constant 0 : index
    %35 = vector.load %arg6[%c0_16, %c0_17] : memref<8x128xf32, #tpu.memory_space<vmem>>, vector<8x128xf32>
    tpu.vector_store %arg6[%c0_16, %c0_17], %34 {strides = array<i32>} : memref<8x128xf32, #tpu.memory_space<vmem>>, vector<8x128xf32>,
    return
  }
  func.func @transform_0(%arg0: i32) -> (i32, i32) {
    %c0_i32 = arith.constant 0 : i32
    %c0_i32_0 = arith.constant 0 : i32
    return %arg0, %c0_i32 : i32, i32
  }
  func.func @transform_1(%arg0: i32) -> (i32, i32) {
    %c0_i32 = arith.constant 0 : i32
    %c0_i32_0 = arith.constant 0 : i32
    %c0_i32_1 = arith.constant 0 : i32
    return %c0_i32, %c0_i32_0 : i32, i32
  }
  func.func @transform_2(%arg0: i32) -> (i32, i32) {
    %c0_i32 = arith.constant 0 : i32
    %c0_i32_0 = arith.constant 0 : i32
    %c0_i32_1 = arith.constant 0 : i32
    return %c0_i32, %c0_i32_0 : i32, i32
  }
  func.func @transform_3(%arg0: i32) -> (i32, i32) {
    %c0_i32 = arith.constant 0 : i32
    %c0_i32_0 = arith.constant 0 : i32
    %c0_i32_1 = arith.constant 0 : i32
    return %c0_i32, %c0_i32_0 : i32, i32
  }
  func.func @transform_4(%arg0: i32) -> (i32, i32) {
    %c0_i32 = arith.constant 0 : i32
    %c0_i32_0 = arith.constant 0 : i32
    %c0_i32_1 = arith.constant 0 : i32
    return %c0_i32, %c0_i32_0 : i32, i32
  }
  func.func @transform_5(%arg0: i32) -> (i32, i32) {
    %c0_i32 = arith.constant 0 : i32
    %c0_i32_0 = arith.constant 0 : i32
    return %arg0, %c0_i32 : i32, i32
  }
}

</mosaic_0001>

<bundles_post_ra>
// kernel: tpu_custom_call.1
= control target key start
LH: loop header
LB: loop body
LE: loop exit
PB: predicated region body
PF: predicated region fallthrough
CT: control target
= control target key end

     0   :  { %10 = vsyncpa [#allocation3], 0  ;;  %s479_s0 = inlined_call_operand.vmem [shape: f32[8,4], index: 0, kind: input, shape index: {}]   ;;  %s480_s1 = inlined_call_operand.vmem [shape: bf16[4,256], index: 1, kind: input, shape index: {}]   ;;  %s481_s2 = inlined_call_operand.vmem [shape: f32[1,256], index: 2, kind: input, shape index: {}]   ;;  %s482_s3 = inlined_call_operand.hbm [shape: bf16[256,128], index: 3, kind: input, shape index: {}]   ;;  %s483_s4 = inlined_call_operand.vmem [shape: f32[1,128], index: 4, kind: input, shape index: {}]   ;;  %s484_s5 = inlined_call_operand.hbm [shape: f32[8,128], index: 5, kind: output, shape index: {}]  }
   0x1   :  { %11 = vsyncpa [#allocation4], 0  ;;  %s22_s20 = sshll.u32 %s482_s3, 4  ;;  %s425_s21 = smov [#allocation2]   ;;  %s23_s20 = int_to_ptr.hbm [resolvable:$true] %s22_s20 }
   0x2   :  { %s24_s22 = sshll.u32 %s425_s21, 4  ;;  %s426_s23 = smov 64   ;;  %s25_s22 = int_to_ptr.vmem [resolvable:$true] %s24_s22 }
   0x3   :  { %s427_s24 = smov 4  }
   0x4   :  { %30 = dma.hbm_to_vmem [thread:$0]  %s23_s20, 2048, %s25_s22, [#allocation3], %s426_s23, %s426_s23, %s427_s24  }
   0x5   :  { %421 = dma.done.wait [#allocation3], 2048  }
   0x6   :  { %422 = vsyncadd [#allocation3], 4294965248  ;;  %v40_v0 = vld [vmem:[%s480_s1] sm:$0xf]  ;;  %v354_v3 = vld [vmem:[#allocation2 + $0x30] sm:$0xff]  ;;  %vm55_vm0 = vcmask 1041408   ;;  %v248_v36 = vlaneseq }
   0x7   :  { %v355_v1 = vld [vmem:[#allocation2 + $0x38] sm:$0xff]  ;;  %48 = vst [vmem:[#allocation1] ss:$4 sm:$0xff] %v40_v0  ;;  %v362_v4 = vld [vmem:[#allocation2 + $0x70] sm:$0xff]  ;;  %v353_v6 = vld [vmem:[#allocation2 + $0x28] sm:$0xff]  ;;  %vm51_vm1 = vcmask 31744  }
   0x8   :  { %v363_v2 = vld [vmem:[#allocation2 + $0x78] sm:$0xff]  ;;  %222 = vmatpush.bf16.msra.mxu2 %v355_v1  ;;  %v361_v7 = vld [vmem:[#allocation2 + $0x68] sm:$0xff]  ;;  %v352_v13 = vld [vmem:[#allocation2 + $0x20] sm:$0xff]  ;;  %v249_v38 = vand.u32 127, %v248_v36  ;;  %s272_s7 = sshll.u32 %s484_s5, 4  ;;  %s273_s7 = int_to_ptr.hbm [resolvable:$true] %s272_s7 }
   0x9   :  { %235 = vmatpush.bf16.msra.mxu3 %v363_v2  ;;  %v38_v5 = vld [vmem:[%s479_s0] sm:$0xff]  ;;  %v360_v14 = vld [vmem:[#allocation2 + $0x60] sm:$0xff]  ;;  %v350_v17 = vld [vmem:[#allocation2 + $0x10] sm:$0xff] }
   0xa   :  { %v39_v12 = vpack.c.bf16 %v38_v5, %v38_v5  ;;  %v351_v15 = vld [vmem:[#allocation2 + $0x18] sm:$0xff]  ;;  %v358_v18 = vld [vmem:[#allocation2 + $0x50] sm:$0xff]  ;;  %v349_v19 = vld [vmem:[#allocation2 + $0x8] sm:$0xff]  ;;  %vm261_vm2 = vcmp.eq.s32.totalorder %v249_v38, 6  ;;  %vm250_vm3 = vcmp.lt.s32.totalorder %v249_v38, 6 }
   0xb   :  { %v359_v16 = vld [vmem:[#allocation2 + $0x58] sm:$0xff]  ;;  %v357_v20 = vld [vmem:[#allocation2 + $0x48] sm:$0xff]  ;;  %v348_v21 = vld [vmem:[#allocation2] sm:$0xff] }
   0xc   :  { %223 = vmatpush.bf16.msra.mxu2 %v354_v3  ;;  %v356_v22 = vld [vmem:[#allocation2 + $0x40] sm:$0xff]  ;;  %v41_v23 = vld [vmem:[%s481_s2] sm:$0x3]  ;;  %s428_s2 = smov [#allocation5]  }
   0xd   :  { %236 = vmatpush.bf16.msra.mxu3 %v362_v4  ;;  %v43_v24 = vperm.slane %v41_v23, 0  ;;  %v44_v25 = vperm.slane %v41_v23, 1  ;;  %v368_v37 = vld [vmem:[%s483_s4] ss:$0 sm:$0xff]  ;;  %s270_s4 = sshll.u32 %s428_s2, 4  ;;  %s271_s4 = int_to_ptr.vmem [resolvable:$true] %s270_s4 }
   0xe   :  { %v49_v8 = vld.sshfl [vmem:[#allocation1] sm:$0xff pattern:$0x73625140]  ;;  %v50_v9 = vld.sshfl [vmem:[#allocation1 + $0x8] sm:$0xff pattern:$0x73625140] }
   0xf   :  { %v56_v10 = vsel %vm55_vm0, %v49_v8, 0  ;;  %v58_v11 = vsel %vm55_vm0, %v50_v9, 0 }
  0x10   :  { %67 = vmatpush.bf16.msra.mxu0 %v56_v10  ;;  %80 = vmatpush.bf16.msra.mxu1 %v58_v11 }
  0x11   :  { %224 = vmatpush.bf16.msra.mxu2 %v353_v6  ;;  %237 = vmatpush.bf16.msra.mxu3 %v361_v7 }
  0x13   :  { %282 = vmatmul.msk.bf16.vlgmr.msra.gmra.mxu0 %vm51_vm1, %v39_v12  ;;  %283 = vmatmul.msk.bf16.vlgmr.msra.gmra.mxu1 %vm51_vm1, %v39_v12 }
  0x15   :  { %225 = vmatpush.bf16.msra.mxu2 %v352_v13  ;;  %238 = vmatpush.bf16.msra.mxu3 %v360_v14 }
  0x19   :  { %226 = vmatpush.bf16.msra.mxu2 %v351_v15  ;;  %239 = vmatpush.bf16.msra.mxu3 %v359_v16 }
  0x1d   :  { %227 = vmatpush.bf16.msra.mxu2 %v350_v17  ;;  %240 = vmatpush.bf16.msra.mxu3 %v358_v18 }
  0x21   :  { %228 = vmatpush.bf16.msra.mxu2 %v349_v19  ;;  %241 = vmatpush.bf16.msra.mxu3 %v357_v20 }
  0x25   :  { %229 = vmatpush.bf16.msra.mxu2 %v348_v21  ;;  %242 = vmatpush.bf16.msra.mxu3 %v356_v22 }
  0x90   :  { %v69_v26 = vpop.f32.mrf.mxu0  ;;  %v82_v27 = vpop.f32.mrf.mxu1 }
  0x91   :  { %v70_v28 = vadd.f32 %v69_v26, %v43_v24  ;;  %v83_v29 = vadd.f32 %v82_v27, %v44_v25 }
  0x93   :  { %v86_v30 = vmax.f32 %v70_v28, 0.0  ;;  %v87_v31 = vmax.f32 %v83_v29, 0.0 }
  0x95   :  { %v88_v32 = vpack.c.bf16 %v86_v30, %v86_v30  ;;  %v89_v33 = vpack.c.bf16 %v87_v31, %v87_v31 }
  0x97   :  { %230 = vmatmul.bf16.vlgmr.msra.gmra.mxu2 %v88_v32  ;;  %243 = vmatmul.bf16.vlgmr.msra.gmra.mxu3 %v89_v33 }
  0x98   :  { %v71_v34 = vpop.f32.mrf.mxu0  ;;  %v84_v35 = vpop.f32.mrf.mxu1 }
 0x11a   :  { %v231_v39 = vpop.f32.mrf.mxu2  ;;  %v244_v40 = vpop.f32.mrf.mxu3 }
 0x11b   :  { %v232_v41 = vadd.f32 %v368_v37, %v231_v39 }
 0x11d   :  { %v245_v42 = vadd.f32 %v244_v40, %v232_v41 }
 0x11f   :  { %v262_v43 = vsel %vm261_vm2, %v245_v42, 0.0  ;;  %v251_v44 = vsel %vm250_vm3, %v245_v42, -1e+30 }
 0x120   :  { %252 = vmax.xlane.f32.xlu0 %v251_v44 }
 0x122   :  { %v233_v45 = vpop.f32.mrf.mxu2  ;;  %v246_v46 = vpop.f32.mrf.mxu3 }
 0x193   :  { %v253_v47 = vpop.xlane.xlu0 %252 }
 0x194   :  { %v254_v48 = vsub.f32 %v251_v44, %v253_v47 }
 0x196   :  { %v255_v49 = vmul.f32 1.442695, %v254_v48 }
 0x198   :  { %369 = vpow2.f32 %v255_v49 }
 0x19e   :  { %v370_v50 = vpop.eup %369 }
 0x19f   :  { %257 = vadd.xlane.f32.xlu0 %v370_v50 }
 0x212   :  { %v258_v51 = vpop.xlane.xlu0 %257 }
 0x213   :  { %371 = vrcp.f32 %v258_v51 }
 0x219   :  { %v372_v52 = vpop.eup %371 }
 0x21a   :  { %v260_v53 = vmul.f32 %v372_v52, %v370_v50 }
 0x21c   :  { %v263_v54 = vsel %vm250_vm3, %v260_v53, %v262_v43 }
 0x21d   :  { %264 = vst [vmem:[#allocation5] sm:$0xff] %v263_v54 }
 0x21e   :  { %275 = dma.vmem_to_hbm [thread:$0]  %s271_s4, 128, %s273_s7, [#allocation4]  }
 0x21f   :  { %423 = dma.done.wait [#allocation4], 128  }
 0x220   :  { %424 = vsyncadd [#allocation4], 4294967168 }
 0x221   :  { %280 = vsyncpa [#allocation3], 1 }
 0x222   :  { %281 = vsyncpa [#allocation4], 1 }

</bundles_post_ra>
